<compile_context>
chip_gen: v7x
topology: tpu7x:2x2x1
jax: 0.10.0
libtpu: 0.0.40
codegen_flags: <defaults>
</compile_context>

<pallas_src>
import functools

import jax
import jax.numpy as jnp
import numpy as np
from jax import lax
from jax.experimental import pallas as pl
from jax.experimental.pallas import tpu as pltpu


def _round_up(a, m):
    return ((a + m - 1) // m) * m


def _wo2_bls_kernel(x_ref, w_ref, vrow_ref, rpad_ref, scal_ref, out_ref, *, n_block):
    """Fused eval-mode forward for one batch tile.

    Shapes per grid step:
      x_ref:    (TILE_B, TD)     flattened input tile (bf16 or f32, double-buffered)
      w_ref:    (TD, NP)  f32    packed weight: cols 0..D-1 = BN-folded mix weight,
                                 col D = wdt⊗wf head/residual weight, rest zero
      vrow_ref: (2, NP)   f32    row0 = s_wdt*wf (cols<D else 0), row1 = one-hot(col D)
      rpad_ref: (NP, TD)  f32    replication matrix: row d -> ones at lanes t*D+d
      scal_ref: (2,)      SMEM   [c, k_out]
      out_ref:  (1, TILE_B) f32  lane-dense per-row output
    """
    c = scal_ref[0]          # sum_t shift_t*wt_t + bt   (BN + fnn_t bias fold)
    k_out = scal_ref[1]      # s_wdt*bf + bdt            (head constant)

    w = w_ref[...]                                   # (TD, NP) — loaded once, reused
    vrow = vrow_ref[...]                             # (2, NP)
    wcol = vrow[0:1, :]                              # (1, NP)
    mask_r = vrow[1:2, :]                            # (1, NP)

    # Upcast right after the load; all accumulation stays in f32.
    x = x_ref[...].astype(jnp.float32)               # (TB, TD)

    if n_block > 1:
        rp = rpad_ref[...]                           # (NP, TD), rows >= D are zero

        def body(_, xc):
            # Mixing block on the MXU: y cols 0..D-1 are the pre-activation mix.
            y = jnp.dot(xc, w, preferred_element_type=jnp.float32)        # (TB, NP)
            m = jnp.maximum(y + c, 0.0)                                   # relu mix
            # Broadcast m over the T axis via MXU (no lane shuffles); extra
            # columns of m are killed by the zero rows of rp.
            return xc + jnp.dot(m, rp, preferred_element_type=jnp.float32)

        x = lax.fori_loop(0, n_block - 1, body, x, unroll=True)

    # Last mixing block fused with dense_feature + dense_time:
    #   out[b] = y[b, D] + sum_d s_wdt*wf_d*relu(y[b, d] + c) + k_out
    y = jnp.dot(x, w, preferred_element_type=jnp.float32)                 # (TB, NP)
    contrib = wcol * jnp.maximum(y + c, 0.0) + mask_r * y                 # (TB, NP)
    out_col = jnp.sum(contrib, axis=-1, keepdims=True) + k_out            # (TB, 1)
    out_ref[...] = jnp.transpose(out_col, (1, 0)).astype(out_ref.dtype)   # (1, TB)


def _vmem_capacity_bytes():
    """Per-generation VMEM capacity (v5e/v6e: 128 MiB, v7x: 64 MiB); conservative fallback."""
    try:
        info = pltpu.get_tpu_info()
        for name in ("vmem_capacity_bytes", "vmem_size_bytes", "vmem_bytes"):
            cap = getattr(info, name, None)
            if cap:
                return int(cap)
    except Exception:
        pass
    return 64 << 20   # conservative (v7x-sized) default


def _select_tile_b(B, b_unit, per_row_bytes, fixed_bytes, budget_bytes, tile_b):
    """Pick the batch tile from the *padded* VMEM footprint.

    Multi-tile runs need TILE_B % 128 == 0 (lane-dense (1, TILE_B) output blocks);
    a single tile may cover the whole (unit-padded) batch.  Batches >= 256 rows are
    split into >= 2 tiles so v7x's two TensorCores both get work.
    """
    b_pad0 = _round_up(max(B, 1), b_unit)
    avail = max(budget_bytes - fixed_bytes, 128 * per_row_bytes)
    max_rows = max(128, int(avail // per_row_bytes))
    if tile_b is not None:
        tile_b = int(tile_b)
        if tile_b >= b_pad0:
            return b_pad0
        return max(128, _round_up(tile_b, 128))
    if b_pad0 <= max_rows:
        if b_pad0 < 256:
            return b_pad0                                   # small batch: one tile
        return max(128, (b_pad0 // 2) // 128 * 128)          # >= 2 tiles (v7x megacore)
    return max(128, (max_rows // 128) * 128)                  # budget-limited tile


def wo2_bls_forward(x, params, n_block=1, tile_b=None, input_dtype=jnp.bfloat16):
    """Eval-mode forward of wo2_BLS as a single fused, batch-tiled Pallas kernel."""
    B, T, D = x.shape
    TD = T * D
    NP = max(128, _round_up(D + 1, 128))   # packed weight columns (lane-aligned)
    f32 = jnp.float32

    # ---- Fold BN / biases / head linears into packed weights (wrapper side) ----
    scale = params["bn_gamma"][:, 0] * lax.rsqrt(params["bn_var"][:, 0] + params["eps"])
    shift = params["bn_beta"][:, 0] - params["bn_mean"][:, 0] * scale
    wt = params["wt"][:, 0]                                  # (T,)
    mix_w = (scale * wt).astype(f32)                         # (T,)  BN-folded mix weight
    c = jnp.sum(shift * wt) + params["bt"][0, 0]             # scalar

    wf0 = params["wf"][0].astype(f32)                        # (D,)
    wdt = params["wdt"][0].astype(f32)                       # (T,)
    s_wdt = jnp.sum(wdt)
    k_out = s_wdt * params["bf"][0, 0] + params["bdt"][0, 0]  # scalar

    rows_t = jnp.arange(TD) // D                             # (TD,) time index of each row
    rows_d = jnp.arange(TD) % D                              # (TD,) feature index of each row
    cols = jnp.arange(NP)                                    # (NP,)
    # Columns 0..D-1: W[t*D+d, d] = scale_t*wt_t ; column D: W[t*D+d, D] = wdt_t*wf_d.
    w_packed = mix_w[rows_t][:, None] * (cols[None, :] == rows_d[:, None]).astype(f32)
    w_packed = w_packed + (wdt[rows_t] * wf0[rows_d])[:, None] * (cols[None, :] == D).astype(f32)
    w_packed = w_packed.astype(f32)                          # (TD, NP)

    wf_pad = jnp.where(cols < D, jnp.pad(wf0, (0, NP - D)), 0.0)
    vrow = jnp.stack([s_wdt * wf_pad, (cols == D).astype(f32)], axis=0)   # (2, NP)

    # Replication matrix for the residual broadcast over T (rows >= D are zero).
    rpad = ((rows_d[None, :] == cols[:, None]) & (cols[:, None] < D)).astype(f32)  # (NP, TD)

    scalars = jnp.stack([c, k_out]).astype(f32)              # (2,) -> SMEM

    # ---- Flatten + (optionally) quantize the input: lane-dense, bf16 halves HBM traffic ----
    x2 = x.reshape(B, TD).astype(input_dtype)
    itemsize_in = jnp.dtype(input_dtype).itemsize
    b_unit = 16 if itemsize_in == 2 else 8                   # sublane packing unit

    # ---- VMEM footprint from the *padded* layout + per-generation budget ----
    td_pad = _round_up(TD, 128)
    in_row = td_pad * itemsize_in
    per_row = (2 * in_row                                    # double-buffered input tile
               + td_pad * 4 * (2 if n_block > 1 else 1)      # f32 upcast (+ loop carry)
               + 2 * NP * 4                                  # y / relu temporaries
               + 2 * 4)                                      # double-buffered (1, TB) output
    fixed = 2 * (2 * td_pad * NP * 4 + 8 * NP * 4) + (2 << 20)   # resident weights + margin
    cap = _vmem_capacity_bytes()
    budget = min(int(cap * 0.55), 80 << 20)

    tile_b = _select_tile_b(B, b_unit, per_row, fixed, budget, tile_b)
    b_pad = _round_up(B, tile_b)
    if b_pad != B:
        x2 = jnp.pad(x2, ((0, b_pad - B), (0, 0)))
    grid = (b_pad // tile_b,)

    footprint = fixed + tile_b * per_row
    vmem_limit = int(min(cap, max(24 << 20, footprint + (4 << 20))))

    kernel = functools.partial(_wo2_bls_kernel, n_block=n_block)
    cost = pl.CostEstimate(
        flops=int(2 * b_pad * TD * NP * (2 * n_block - 1)),
        transcendentals=0,
        bytes_accessed=int(b_pad * TD * itemsize_in + 2 * TD * NP * 4 + b_pad * 4),
    )

    out = pl.pallas_call(
        kernel,
        grid=grid,
        in_specs=[
            pl.BlockSpec((tile_b, TD), lambda i: (i, 0)),        # x tile (pipelined)
            pl.BlockSpec((TD, NP), lambda i: (0, 0)),            # packed weight (resident)
            pl.BlockSpec((2, NP), lambda i: (0, 0)),             # head rows (resident)
            pl.BlockSpec((NP, TD), lambda i: (0, 0)),            # replication matrix
            pl.BlockSpec(memory_space=pltpu.MemorySpace.SMEM),   # scalars [c, k_out]
        ],
        out_specs=pl.BlockSpec((1, tile_b), lambda i: (0, i)),   # lane-dense output
        out_shape=jax.ShapeDtypeStruct((1, b_pad), jnp.float32),
        compiler_params=pltpu.CompilerParams(
            dimension_semantics=("parallel",),
            vmem_limit_bytes=vmem_limit,
        ),
        cost_estimate=cost,
    )(x2, w_packed, vrow, rpad, scalars)

    return out[0, :B][:, None]                                   # (B, 1)


def init_params(key, time_len, input_dim):
    """Deterministic parameter init mirroring the module's __init__ shapes."""
    T, D = time_len, input_dim
    k = jax.random.split(key, 6)

    def _uniform(key, shape, fan_in):
        bound = 1.0 / np.sqrt(fan_in)
        return jax.random.uniform(key, shape, jnp.float32, -bound, bound)

    return {
        # BatchNorm2d(time_len, eps=input_dim) — PyTorch default init.
        "bn_gamma": jnp.ones((T, 1), jnp.float32),
        "bn_beta": jnp.zeros((T, 1), jnp.float32),
        "bn_mean": jnp.zeros((T, 1), jnp.float32),
        "bn_var": jnp.ones((T, 1), jnp.float32),
        "eps": float(D),
        # fnn_t = Linear(T, 1): weight (1, T) stored transposed as (T, 1).
        "wt": _uniform(k[0], (T, 1), T),
        "bt": _uniform(k[1], (1, 1), T),
        # dense_feature = Linear(D, 1): weight (1, D).
        "wf": _uniform(k[2], (1, D), D),
        "bf": _uniform(k[3], (1, 1), D),
        # dense_time = Linear(T, 1): weight (1, T).
        "wdt": _uniform(k[4], (1, T), T),
        "bdt": _uniform(k[5], (1, 1), T),
    }


def _reference_forward(x, p, n_block=1):
    """Exact host-side (NumPy, float64) reference of the eval-mode PyTorch forward."""
    x = np.asarray(x, np.float64)
    scale = np.asarray(p["bn_gamma"][:, 0], np.float64) / np.sqrt(
        np.asarray(p["bn_var"][:, 0], np.float64) + p["eps"])
    shift = np.asarray(p["bn_beta"][:, 0], np.float64) - np.asarray(p["bn_mean"][:, 0], np.float64) * scale
    wt = np.asarray(p["wt"][:, 0], np.float64)
    bt = float(p["bt"][0, 0])
    wf = np.asarray(p["wf"][0], np.float64)
    bf = float(p["bf"][0, 0])
    wdt = np.asarray(p["wdt"][0], np.float64)
    bdt = float(p["bdt"][0, 0])
    for _ in range(n_block):
        y = x * scale[None, :, None] + shift[None, :, None]
        m = np.maximum(np.einsum("btd,t->bd", y, wt) + bt, 0.0)
        x = x + m[:, None, :]
    f = np.einsum("btd,d->bt", x, wf) + bf                       # squeeze -> (B, T)
    return (np.einsum("bt,t->b", f, wdt) + bdt)[:, None]          # (B, 1)


if __name__ == "__main__":
    key = jax.random.PRNGKey(0)
    kx, kp, kx2, kx3 = jax.random.split(key, 4)

    # Primary small-shape check: B=2, time_len=8, input_dim=32, n_block=1.
    B, T, D = 2, 8, 32
    x = jax.random.normal(kx, (B, T, D), dtype=jnp.float32)
    params = init_params(kp, T, D)

    # Tolerances cover MXU matmul operand precision (kernel math itself is exact-f32 fused).
    # 1) f32-ingest path vs exact reference.
    out32 = jax.block_until_ready(wo2_bls_forward(x, params, n_block=1, input_dtype=jnp.float32))
    assert out32.shape == (B, 1), out32.shape
    np.testing.assert_allclose(np.asarray(out32), _reference_forward(x, params, 1),
                               rtol=5e-3, atol=5e-3)

    # 2) Default bf16-ingest path vs reference on the same bf16-quantized input.
    out16 = jax.block_until_ready(wo2_bls_forward(x, params, n_block=1))
    xq = np.asarray(x.astype(jnp.bfloat16).astype(jnp.float32))
    np.testing.assert_allclose(np.asarray(out16), _reference_forward(xq, params, 1),
                               rtol=5e-3, atol=5e-3)

    # 3) Multi-tile + padded batch + n_block>1 (pipelined grid + residual matmul path).
    B2 = 200
    x2 = jax.random.normal(kx2, (B2, T, D), dtype=jnp.float32)
    out2 = jax.block_until_ready(wo2_bls_forward(x2, params, n_block=2, tile_b=128))
    x2q = np.asarray(x2.astype(jnp.bfloat16).astype(jnp.float32))
    assert out2.shape == (B2, 1), out2.shape
    np.testing.assert_allclose(np.asarray(out2), _reference_forward(x2q, params, 2),
                               rtol=5e-3, atol=5e-3)

    # 4) Automatic tile selection with a larger batch (>= 2 grid tiles for v7x's 2 cores).
    B3 = 600
    x3 = jax.random.normal(kx3, (B3, T, D), dtype=jnp.float32)
    out3 = jax.block_until_ready(wo2_bls_forward(x3, params, n_block=1))
    x3q = np.asarray(x3.astype(jnp.bfloat16).astype(jnp.float32))
    assert out3.shape == (B3, 1), out3.shape
    np.testing.assert_allclose(np.asarray(out3), _reference_forward(x3q, params, 1),
                               rtol=5e-3, atol=5e-3)

    print("KERNEL_OK")
</pallas_src>

<mosaic_0001>
module attributes {stable_mosaic.version = 11 : i64} {
  func.func @_wo2_bls_kernel(%arg0: i32, %arg1: memref<8x256xf32, #tpu.memory_space<vmem>>, %arg2: memref<256x128xf32, #tpu.memory_space<vmem>>, %arg3: memref<2x128xf32, #tpu.memory_space<vmem>>, %arg4: memref<128x256xf32, #tpu.memory_space<vmem>>, %arg5: memref<2xf32, #tpu.memory_space<smem>>, %arg6: memref<1x8xf32, #tpu.memory_space<vmem>>) attributes {dimension_semantics = [#tpu.dimension_semantics<parallel>], iteration_bounds = array<i64: 1>, scalar_prefetch = 0 : i64, scratch_operands = 0 : i64, tpu.core_type = #tpu.core_type<tc>, window_params = [{transform_indices = @transform_0, window_bounds = array<i64: 8, 256>}, {pipeline_mode = #tpu.pipeline_mode<synchronous>, transform_indices = @transform_1, window_bounds = array<i64: 256, 128>}, {pipeline_mode = #tpu.pipeline_mode<synchronous>, transform_indices = @transform_2, window_bounds = array<i64: 2, 128>}, {pipeline_mode = #tpu.pipeline_mode<synchronous>, transform_indices = @transform_3, window_bounds = array<i64: 128, 256>}, {transform_indices = @transform_4, window_bounds = array<i64: 2>}, {transform_indices = @transform_5, window_bounds = array<i64: 1, 8>}]} {
    %c0 = arith.constant 0 : index
    %0 = memref.load %arg5[%c0] : memref<2xf32, #tpu.memory_space<smem>>
    %c1 = arith.constant 1 : index
    %1 = memref.load %arg5[%c1] : memref<2xf32, #tpu.memory_space<smem>>
    %c0_0 = arith.constant 0 : index
    %c0_1 = arith.constant 0 : index
    %2 = vector.load %arg2[%c0_0, %c0_1] : memref<256x128xf32, #tpu.memory_space<vmem>>, vector<256x128xf32>
    %c0_2 = arith.constant 0 : index
    %c0_3 = arith.constant 0 : index
    %3 = vector.load %arg3[%c0_2, %c0_3] : memref<2x128xf32, #tpu.memory_space<vmem>>, vector<2x128xf32>
    %4 = vector.extract_strided_slice %3 {offsets = [0, 0], sizes = [1, 128], strides = [1, 1]} : vector<2x128xf32> to vector<1x128xf32>
    %5 = vector.extract_strided_slice %3 {offsets = [1, 0], sizes = [1, 128], strides = [1, 1]} : vector<2x128xf32> to vector<1x128xf32>
    %c0_4 = arith.constant 0 : index
    %c0_5 = arith.constant 0 : index
    %6 = vector.load %arg1[%c0_4, %c0_5] : memref<8x256xf32, #tpu.memory_space<vmem>>, vector<8x256xf32>
    %cst = arith.constant dense<0.000000e+00> : vector<8x128xf32>
    %7 = tpu.matmul %6, %2, %cst {dimension_numbers = #tpu.dot_dimension_numbers<[1], [0], [0], [1], [0, 0, 1, 1], [], []>} : vector<8x256xf32>, vector<256x128xf32>, vector<8x128xf32> -> vector<8x128xf32>
    %8 = vector.broadcast %0 : f32 to vector<8x128xf32>
    %9 = arith.addf %7, %8 : vector<8x128xf32>
    %cst_6 = arith.constant 0.000000e+00 : f32
    %10 = vector.broadcast %cst_6 : f32 to vector<8x128xf32>
    %11 = arith.maximumf %9, %10 : vector<8x128xf32>
    %12 = vector.broadcast %4 : vector<1x128xf32> to vector<8x128xf32>
    %13 = arith.mulf %12, %11 : vector<8x128xf32>
    %14 = vector.broadcast %5 : vector<1x128xf32> to vector<8x128xf32>
    %15 = arith.mulf %14, %7 : vector<8x128xf32>
    %16 = arith.addf %13, %15 : vector<8x128xf32>
    %cst_7 = arith.constant dense<0.000000e+00> : vector<8xf32>
    %17 = vector.multi_reduction <add>, %16, %cst_7 [1] : vector<8x128xf32> to vector<8xf32>
    %18 = vector.shape_cast %17 : vector<8xf32> to vector<8x1xf32>
    %19 = vector.broadcast %1 : f32 to vector<8x1xf32>
    %20 = arith.addf %18, %19 : vector<8x1xf32>
    %21 = tpu.transpose %20, [1, 0] : vector<8x1xf32> -> vector<1x8xf32>
    %c0_8 = arith.constant 0 : index
    %c0_9 = arith.constant 0 : index
    %22 = vector.load %arg6[%c0_8, %c0_9] : memref<1x8xf32, #tpu.memory_space<vmem>>, vector<1x8xf32>
    tpu.vector_store %arg6[%c0_8, %c0_9], %21 {strides = array<i32>} : memref<1x8xf32, #tpu.memory_space<vmem>>, vector<1x8xf32>,
    return
  }
  func.func @transform_0(%arg0: i32) -> (i32, i32) {
    %c0_i32 = arith.constant 0 : i32
    %c0_i32_0 = arith.constant 0 : i32
    return %arg0, %c0_i32 : i32, i32
  }
  func.func @transform_1(%arg0: i32) -> (i32, i32) {
    %c0_i32 = arith.constant 0 : i32
    %c0_i32_0 = arith.constant 0 : i32
    %c0_i32_1 = arith.constant 0 : i32
    return %c0_i32, %c0_i32_0 : i32, i32
  }
  func.func @transform_2(%arg0: i32) -> (i32, i32) {
    %c0_i32 = arith.constant 0 : i32
    %c0_i32_0 = arith.constant 0 : i32
    %c0_i32_1 = arith.constant 0 : i32
    return %c0_i32, %c0_i32_0 : i32, i32
  }
  func.func @transform_3(%arg0: i32) -> (i32, i32) {
    %c0_i32 = arith.constant 0 : i32
    %c0_i32_0 = arith.constant 0 : i32
    %c0_i32_1 = arith.constant 0 : i32
    return %c0_i32, %c0_i32_0 : i32, i32
  }
  func.func @transform_4(%arg0: i32) -> i32 {
    %c0_i32 = arith.constant 0 : i32
    %c0_i32_0 = arith.constant 0 : i32
    return %c0_i32 : i32
  }
  func.func @transform_5(%arg0: i32) -> (i32, i32) {
    %c0_i32 = arith.constant 0 : i32
    %c0_i32_0 = arith.constant 0 : i32
    return %c0_i32, %arg0 : i32, i32
  }
}

</mosaic_0001>

<bundles_post_ra>
// kernel: tpu_custom_call.1
= control target key start
LH: loop header
LB: loop body
LE: loop exit
PB: predicated region body
PF: predicated region fallthrough
CT: control target
= control target key end

     0   :  { %10 = vsyncpa [#allocation3], 0  ;;  %s528_s0 = inlined_call_operand.hbm [shape: f32[8,256], index: 0, kind: input, shape index: {}]   ;;  %s529_s1 = inlined_call_operand.hbm [shape: f32[256,128], index: 1, kind: input, shape index: {}]   ;;  %s530_s2 = inlined_call_operand.vmem [shape: f32[2,128], index: 2, kind: input, shape index: {}]   ;;  %s531_s3 = inlined_call_operand.hbm [shape: f32[128,256], index: 3, kind: input, shape index: {}]   ;;  %s532_s4 = inlined_call_operand.vmem [shape: f32[2], index: 4, kind: input, shape index: {}]   ;;  %s533_s5 = inlined_call_operand.hbm [shape: f32[1,8], index: 5, kind: output, shape index: {}]  }
   0x1   :  { %11 = vsyncpa [#allocation7], 0 }
   0x2   :  { %12 = vsyncpa [#allocation5], 0 }
   0x3   :  { %13 = vsyncpa [#allocation4], 0  ;;  %s435_s18 = smov [#allocation6]   ;;  %s327_s22 = scalar_lea.hbm %s529_s1, 4096 }
   0x4   :  { %s29_s19 = sshll.u32 %s435_s18, 4  ;;  %p328_p0 = scmp.ne.s32.totalorder %s529_s1, %s327_s22  ;;  %s30_s19 = int_to_ptr.vmem [resolvable:$true] %s29_s19 }
   0x5   :  { %p331_p1 = scmp.lt.u32.totalorder %s327_s22, %s529_s1 }
   0x7   :  { %p333_p2 = pnand %p331_p1, %p328_p0 }
   0x9   :  { %336 = shalt.err (!%p333_p2)
}
   0xa   :  { %s337_s27 = scalar_lea.vmem %s30_s19, 4096  ;;  %p342_p4 = scmp.lt.s32.totalorder %s30_s19, %s30_s19 }
   0xb   :  { %p338_p3 = scmp.ne.s32.totalorder %s30_s19, %s337_s27  ;;  %p343_p5 = scmp.lt.s32.totalorder %s337_s27, %s337_s27 }
   0xd   :  { %p344_p6 = por %p343_p5, %p342_p4 }
   0xf   :  { %p345_p7 = pnand %p344_p6, %p338_p3 }
  0x11   :  { %348 = shalt.err (!%p345_p7)
}
  0x12   :  { %s436_s28 = smov 128   ;;  %s437_s29 = smov 8  }
  0x13   :  { %35 = dma.hbm_to_vmem [thread:$0]  %s529_s1, 4096, %s30_s19, [#allocation7], %s436_s28, %s436_s28, %s437_s29  }
  0x14   :  { %s438_s7 = smov [#allocation2]   ;;  %s439_s9 = smov [#allocation8]  }
  0x15   :  { %s20_s8 = sshll.u32 %s438_s7, 4  ;;  %s43_s10 = sshll.u32 %s439_s9, 4  ;;  %s21_s8 = int_to_ptr.vmem [resolvable:$true] %s20_s8  ;;  %s44_s10 = int_to_ptr.vmem [resolvable:$true] %s43_s10 }
  0x16   :  { %s349_s13 = scalar_lea.hbm %s528_s0, 256 }
  0x17   :  { %p350_p8 = scmp.ne.s32.totalorder %s528_s0, %s349_s13  ;;  %p353_p9 = scmp.lt.u32.totalorder %s349_s13, %s528_s0 }
  0x19   :  { %p355_p10 = pnand %p353_p9, %p350_p8 }
  0x1b   :  { %358 = shalt.err (!%p355_p10)
}
  0x1c   :  { %s359_s1 = scalar_lea.vmem %s21_s8, 256  ;;  %p364_p12 = scmp.lt.s32.totalorder %s21_s8, %s21_s8 }
  0x1d   :  { %p360_p11 = scmp.ne.s32.totalorder %s21_s8, %s359_s1  ;;  %p365_p13 = scmp.lt.s32.totalorder %s359_s1, %s359_s1 }
  0x1f   :  { %p366_p0 = por %p365_p13, %p364_p12 }
  0x21   :  { %p367_p1 = pnand %p366_p0, %p360_p11 }
  0x23   :  { %370 = shalt.err (!%p367_p1)
}
  0x24   :  { %23 = dma.hbm_to_vmem [thread:$0]  %s528_s0, 256, %s21_s8, [#allocation3]  }
  0x25   :  { %s56_s22 = sshll.u32 %s532_s4, 4  ;;  %s371_s25 = scalar_lea.hbm %s531_s3, 4096  ;;  %s57_s22 = int_to_ptr.vmem [resolvable:$true] %s56_s22 }
  0x26   :  { %p372_p2 = scmp.ne.s32.totalorder %s531_s3, %s371_s25  ;;  %p375_p3 = scmp.lt.u32.totalorder %s371_s25, %s531_s3 }
  0x28   :  { %p377_p4 = pnand %p375_p3, %p372_p2 }
  0x2a   :  { %380 = shalt.err (!%p377_p4)
}
  0x2b   :  { %s381_s0 = scalar_lea.vmem %s44_s10, 4096  ;;  %p386_p6 = scmp.lt.s32.totalorder %s44_s10, %s44_s10 }
  0x2c   :  { %p382_p5 = scmp.ne.s32.totalorder %s44_s10, %s381_s0  ;;  %p387_p7 = scmp.lt.s32.totalorder %s381_s0, %s381_s0 }
  0x2e   :  { %p388_p8 = por %p387_p7, %p386_p6 }
  0x30   :  { %p389_p9 = pnand %p388_p8, %p382_p5 }
  0x32   :  { %392 = shalt.err (!%p389_p9)
}
  0x33   :  { %s440_s4 = smov 256   ;;  %s441_s30 = smov 16  }
  0x34   :  { %49 = dma.hbm_to_vmem [thread:$0]  %s531_s3, 4096, %s44_s10, [#allocation7], %s440_s4, %s440_s4, %s441_s30  }
  0x35   :  { %s393_s8 = scalar_lea.vmem %s57_s22, 16  ;;  %p398_p11 = scmp.lt.s32.totalorder %s57_s22, %s57_s22 }
  0x36   :  { %p394_p10 = scmp.ne.s32.totalorder %s57_s22, %s393_s8  ;;  %p399_p12 = scmp.lt.s32.totalorder %s393_s8, %s393_s8 }
  0x38   :  { %p400_p13 = por %p399_p12, %p398_p11 }
  0x3a   :  { %p401_p0 = pnand %p400_p13, %p394_p10 }
  0x3c   :  { %404 = shalt.err (!%p401_p0)
}
  0x3d   :  { %s442_s9 = smov [#allocation9]  }
  0x3e   :  { %59 = dma.vmem_to_smem %s57_s22, 16, %s442_s9, [#allocation5]  }
  0x3f   :  { %427 = dma.done.wait [#allocation3], 256  }
  0x40   :  { %428 = vsyncadd [#allocation3], 4294967040 }
  0x41   :  { %429 = dma.done.wait [#allocation7], 8192  }
  0x42   :  { %430 = vsyncadd [#allocation7], 4294959104 }
  0x43   :  { %431 = dma.done.wait [#allocation5], 16  }
  0x44   :  { %432 = vsyncadd [#allocation5], 4294967280 }
  0x45   :  { %72 = sfence }
  0x46   :  { %v91_v0 = vld [vmem:[#allocation6 + $0x80] sm:$0xff]  ;;  %v92_v1 = vld [vmem:[#allocation6 + $0x88] sm:$0xff]  ;;  %v93_v5 = vld [vmem:[#allocation6 + $0x90] sm:$0xff]  ;;  %v183_v50 = vlaneseq  ;;  %s73_s3 = sld [smem:[#allocation9]]  ;;  %s249_s12 = sld [smem:[#allocation9 + $0x1]]  ;;  %vm230_vm0 = vcmask 57344  }
  0x47   :  { %v75_v2 = vld [vmem:[#allocation6] sm:$0xff]  ;;  %v285_v3 = vpack.c.bf16 %v92_v1, %v91_v0  ;;  %v76_v4 = vld [vmem:[#allocation6 + $0x8] sm:$0xff]  ;;  %v94_v6 = vld [vmem:[#allocation6 + $0x98] sm:$0xff]  ;;  %s443_s13 = smov [#allocation10]  }
  0x48   :  { %v287_v7 = vpack.c.bf16 %v76_v4, %v75_v2  ;;  %v289_v8 = vpack.c.bf16 %v94_v6, %v93_v5  ;;  %v77_v9 = vld [vmem:[#allocation6 + $0x10] sm:$0xff]  ;;  %v78_v10 = vld [vmem:[#allocation6 + $0x18] sm:$0xff]  ;;  %v95_v11 = vld [vmem:[#allocation6 + $0xa0] sm:$0xff]  ;;  %v184_v51 = vshrl.u32 %v183_v50, 7  ;;  %s238_s14 = sshll.u32 %s443_s13, 4  ;;  %s239_s14 = int_to_ptr.vmem [resolvable:$true] %s238_s14 }
  0x49   :  { %286 = vmatprep.subr.bf16.mxu0 %v285_v3  ;;  %v96_v12 = vld [vmem:[#allocation6 + $0xa8] sm:$0xff]  ;;  %v291_v13 = vpack.c.bf16 %v78_v10, %v77_v9  ;;  %v79_v15 = vld [vmem:[#allocation6 + $0x20] sm:$0xff]  ;;  %v97_v17 = vld [vmem:[#allocation6 + $0xb0] sm:$0xff]  ;;  %s409_s15 = scalar_lea.vmem %s239_s14, 32  ;;  %p410_p2 = scmp.lt.s32.totalorder %s239_s14, %s239_s14 }
  0x4a   :  { %288 = vmatpush3.bf16.msra.mxu0 %v287_v7  ;;  %v293_v14 = vpack.c.bf16 %v96_v12, %v95_v11  ;;  %v80_v16 = vld [vmem:[#allocation6 + $0x28] sm:$0xff]  ;;  %v98_v18 = vld [vmem:[#allocation6 + $0xb8] sm:$0xff]  ;;  %v81_v21 = vld [vmem:[#allocation6 + $0x30] sm:$0xff]  ;;  %v185_v53 = vsub.s32 0, %v184_v51  ;;  %v190_v54 = vsub.s32 1, %v184_v51 }
  0x4b   :  { %290 = vmatprep.subr.bf16.mxu0 %v289_v8  ;;  %v295_v19 = vpack.c.bf16 %v80_v16, %v79_v15  ;;  %v297_v20 = vpack.c.bf16 %v98_v18, %v97_v17  ;;  %v82_v22 = vld [vmem:[#allocation6 + $0x38] sm:$0xff]  ;;  %v99_v23 = vld [vmem:[#allocation6 + $0xc0] sm:$0xff]  ;;  %v100_v24 = vld [vmem:[#allocation6 + $0xc8] sm:$0xff] }
  0x4c   :  { %v109_v25 = vld [vmem:[#allocation2 + $0x8] sm:$0xff]  ;;  %v299_v26 = vpack.c.bf16 %v82_v22, %v81_v21  ;;  %v301_v27 = vpack.c.bf16 %v100_v24, %v99_v23  ;;  %v83_v28 = vld [vmem:[#allocation6 + $0x40] sm:$0xff]  ;;  %v84_v29 = vld [vmem:[#allocation6 + $0x48] sm:$0xff]  ;;  %v180_v56 = vstv %s73_s3  ;;  %v196_v2 = vstv %s249_s12 }
  0x4d   :  { %174 = vmatprep.mubr.f32.mxu0 %v109_v25  ;;  %v101_v30 = vld [vmem:[#allocation6 + $0xd0] sm:$0xff]  ;;  %v102_v31 = vld [vmem:[#allocation6 + $0xd8] sm:$0xff]  ;;  %v303_v32 = vpack.c.bf16 %v84_v29, %v83_v28  ;;  %v103_v36 = vld [vmem:[#allocation6 + $0xe0] sm:$0xff] }
  0x4e   :  { %292 = vmatpush3.bf16.msra.mxu0 %v291_v13  ;;  %v305_v33 = vpack.c.bf16 %v102_v31, %v101_v30  ;;  %v85_v34 = vld [vmem:[#allocation6 + $0x50] sm:$0xff]  ;;  %v86_v35 = vld [vmem:[#allocation6 + $0x58] sm:$0xff]  ;;  %v104_v37 = vld [vmem:[#allocation6 + $0xe8] sm:$0xff] }
  0x4f   :  { %294 = vmatprep.subr.bf16.mxu0 %v293_v14  ;;  %v307_v38 = vpack.c.bf16 %v86_v35, %v85_v34  ;;  %v309_v39 = vpack.c.bf16 %v104_v37, %v103_v36  ;;  %v87_v40 = vld [vmem:[#allocation6 + $0x60] sm:$0xff]  ;;  %v88_v41 = vld [vmem:[#allocation6 + $0x68] sm:$0xff]  ;;  %v105_v42 = vld [vmem:[#allocation6 + $0xf0] sm:$0xff] }
  0x50   :  { %v106_v43 = vld [vmem:[#allocation6 + $0xf8] sm:$0xff]  ;;  %v311_v44 = vpack.c.bf16 %v88_v41, %v87_v40  ;;  %v89_v46 = vld [vmem:[#allocation6 + $0x70] sm:$0xff] }
  0x51   :  { %v313_v45 = vpack.c.bf16 %v106_v43, %v105_v42  ;;  %v90_v47 = vld [vmem:[#allocation6 + $0x78] sm:$0xff]  ;;  %v108_v49 = vld [vmem:[#allocation2] sm:$0xff] }
  0x52   :  { %296 = vmatpush3.bf16.msra.mxu0 %v295_v19  ;;  %v315_v48 = vpack.c.bf16 %v90_v47, %v89_v46  ;;  %v107_v57 = vld [vmem:[%s530_s2] sm:$0x3]  ;;  %s405_s2 = scalar_lea.vmem %s239_s14, 16 }
  0x53   :  { %298 = vmatprep.subr.bf16.mxu0 %v297_v20  ;;  %v186_v60 = vrot.slane %v107_v57, %v185_v53  ;;  %v191_v61 = vrot.slane %v107_v57, %v190_v54  ;;  %p406_p1 = scmp.ne.s32.totalorder %s239_s14, %s405_s2  ;;  %p411_p3 = scmp.lt.s32.totalorder %s409_s15, %s405_s2 }
  0x55   :  { %p412_p4 = por %p411_p3, %p410_p2 }
  0x56   :  { %300 = vmatpush3.bf16.msra.mxu0 %v299_v26 }
  0x57   :  { %302 = vmatprep.subr.bf16.mxu0 %v301_v27  ;;  %p413_p5 = pnand %p412_p4, %p406_p1 }
  0x5a   :  { %304 = vmatpush3.bf16.msra.mxu0 %v303_v32 }
  0x5b   :  { %306 = vmatprep.subr.bf16.mxu0 %v305_v33 }
  0x5e   :  { %308 = vmatpush3.bf16.msra.mxu0 %v307_v38 }
  0x5f   :  { %310 = vmatprep.subr.bf16.mxu0 %v309_v39 }
  0x62   :  { %312 = vmatpush3.bf16.msra.mxu0 %v311_v44 }
  0x63   :  { %314 = vmatprep.subr.bf16.mxu0 %v313_v45 }
  0x66   :  { %316 = vmatpush3.bf16.msra.mxu0 %v315_v48 }
  0x69   :  { %175 = vmatmul.mubr.f32.vlgmr.msra.gmra.mrb[0].mxu0 %v108_v49 }
 0x13c   :  { %v282_v52 = vpop.f32.mrb[0].mxu0 }
 0x13d   :  { %v283_v55 = vpop.f32.mrb[1].mxu0 }
 0x13e   :  { %v284_v58 = vadd.f32 %v283_v55, %v282_v52 }
 0x140   :  { %v181_v59 = vadd.f32 %v284_v58, %v180_v56  ;;  %v192_v0 = vmul.f32 %v284_v58, %v191_v61 }
 0x142   :  { %v182_v62 = vmax.f32 %v181_v59, 0.0 }
 0x144   :  { %v187_v63 = vmul.f32 %v186_v60, %v182_v62 }
 0x146   :  { %v193_v1 = vadd.f32 %v192_v0, %v187_v63 }
 0x148   :  { %194 = vadd.xlane.f32.xlu0 %v193_v1 }
 0x1d5   :  { %v195_v3 = vpop.xlane.xlu0 %194 }
 0x1d6   :  { %v197_v4 = vadd.f32 %v196_v2, %v195_v3 }
 0x1d8   :  { %198 = vxpose.xlu0.b32.start.end [1/1] (short) (narrow) %v197_v4, 8 }
 0x258   :  { %v214_v5 = vpop.trf.xlu0 }
 0x259   :  { %231 = vst.msk [vmem:[#allocation10] sm:$0x1] %vm230_vm0, %v214_v5 }
 0x25a   :  { %416 = shalt.err (!%p413_p5)
}
 0x25b   :  { %s417_s1 = scalar_lea.hbm %s533_s5, 16 }
 0x25c   :  { %p418_p6 = scmp.ne.s32.totalorder %s533_s5, %s417_s1  ;;  %p421_p7 = scmp.lt.u32.totalorder %s417_s1, %s533_s5 }
 0x25e   :  { %p423_p8 = pnand %p421_p7, %p418_p6 }
 0x260   :  { %426 = shalt.err (!%p423_p8)
}
 0x261   :  { %241 = dma.vmem_to_hbm [thread:$0]  %s239_s14, 16, %s533_s5, [#allocation4]  }
 0x262   :  { %433 = dma.done.wait [#allocation4], 16  }
 0x263   :  { %434 = vsyncadd [#allocation4], 4294967280 }
 0x264   :  { %245 = vsyncpa [#allocation3], 1 }
 0x265   :  { %246 = vsyncpa [#allocation7], 1 }
 0x266   :  { %247 = vsyncpa [#allocation4], 1 }
 0x267   :  { %248 = vsyncpa [#allocation5], 1 }

</bundles_post_ra>
